<compile_context>
chip_gen: v7x
topology: tpu7x:2x2x1
jax: 0.10.0
libtpu: 0.0.40
codegen_flags: <defaults>
</compile_context>

<pallas_src>
import jax
import jax.numpy as jnp
from jax.experimental import pallas as pl
from jax.experimental.pallas import tpu as pltpu

EPS = 1e-5
LANE = 128
VMEM_LIMIT = 64 * 1024 * 1024


# ---------------------------------------------------------------------------
# small helpers
# ---------------------------------------------------------------------------
def _round_up(x, m):
    return ((x + m - 1) // m) * m


def _pad_axis(a, axis, target):
    if a.shape[axis] == target:
        return a
    widths = [(0, 0)] * a.ndim
    widths[axis] = (0, target - a.shape[axis])
    return jnp.pad(a, widths)


def _pick_tm(M, tm_max=512):
    """Largest tile (<= tm_max) that divides M, so no activation padding is needed."""
    for t in (512, 256, 128, 64, 32, 16, 8):
        if t <= tm_max and M % t == 0:
            return t, M
    Mp = _round_up(M, 8)          # fallback: ragged M -> pad to sublane multiple
    return 8, Mp


def _fold_bn(gamma, beta, mean, var):
    scale = gamma / jnp.sqrt(var + EPS)
    shift = beta - mean * scale
    return scale, shift


# ---------------------------------------------------------------------------
# Kernel 1: fused (X @ W) * scale + shift  [+ residual | + (R @ Wr)*sr+br]  [relu]
# Used for conv1 (1x1) and for conv3 (+ residual branch fused in).
# ---------------------------------------------------------------------------
def _make_matmul_kernel(relu, mode):
    def kernel(*refs):
        if mode == "matmul":
            x_ref, w_ref, sc_ref, sh_ref, r_ref, wr_ref, rsc_ref, rsh_ref, o_ref = refs
        elif mode == "add":
            x_ref, w_ref, sc_ref, sh_ref, r_ref, o_ref = refs
        else:
            x_ref, w_ref, sc_ref, sh_ref, o_ref = refs

        # bf16 x bf16 -> f32 accumulation, default (single-pass) MXU precision.
        acc = jnp.dot(x_ref[...], w_ref[...], preferred_element_type=jnp.float32)
        acc = acc * sc_ref[...] + sh_ref[...]
        if mode == "matmul":
            racc = jnp.dot(r_ref[...], wr_ref[...], preferred_element_type=jnp.float32)
            acc = acc + racc * rsc_ref[...] + rsh_ref[...]
        elif mode == "add":
            acc = acc + r_ref[...].astype(jnp.float32)
        if relu:
            acc = jnp.maximum(acc, 0.0)
        o_ref[...] = acc.astype(o_ref.dtype)

    return kernel


def fused_matmul_bn(x, w, scale, shift, *, residual=None, res_w=None,
                    res_scale=None, res_shift=None, relu=True,
                    out_dtype=jnp.float32, tm_max=512):
    """x:(M,K)bf16 @ w:(K,Np)bf16, folded BN scale/shift:(Np,)f32.
    residual: (M,Np) added directly, or (M,Kr) matmul'd with res_w:(Kr,Np)."""
    M, K = x.shape
    _, Np = w.shape
    tm, Mp = _pick_tm(M, tm_max)
    if Mp != M:
        x = jnp.pad(x, ((0, Mp - M), (0, 0)))
        if residual is not None:
            residual = jnp.pad(residual, ((0, Mp - M), (0, 0)))

    in_specs = [
        pl.BlockSpec((tm, K), lambda i: (i, 0)),
        pl.BlockSpec((K, Np), lambda i: (0, 0)),
        pl.BlockSpec((1, Np), lambda i: (0, 0)),
        pl.BlockSpec((1, Np), lambda i: (0, 0)),
    ]
    args = [x, w, scale.reshape(1, Np), shift.reshape(1, Np)]
    if residual is None:
        mode = "none"
    else:
        Kr = residual.shape[1]
        in_specs.append(pl.BlockSpec((tm, Kr), lambda i: (i, 0)))
        args.append(residual)
        if res_w is None:
            mode = "add"
        else:
            mode = "matmul"
            in_specs += [
                pl.BlockSpec((Kr, Np), lambda i: (0, 0)),
                pl.BlockSpec((1, Np), lambda i: (0, 0)),
                pl.BlockSpec((1, Np), lambda i: (0, 0)),
            ]
            args += [res_w, res_scale.reshape(1, Np), res_shift.reshape(1, Np)]

    out = pl.pallas_call(
        _make_matmul_kernel(relu, mode),
        out_shape=jax.ShapeDtypeStruct((Mp, Np), out_dtype),
        grid_spec=pltpu.PrefetchScalarGridSpec(
            num_scalar_prefetch=0,
            grid=(Mp // tm,),
            in_specs=in_specs,
            out_specs=pl.BlockSpec((tm, Np), lambda i: (i, 0)),
        ),
        compiler_params=pltpu.CompilerParams(
            dimension_semantics=("parallel",),
            vmem_limit_bytes=VMEM_LIMIT,
        ),
    )(*args)
    return out if Mp == M else out[:M]


# ---------------------------------------------------------------------------
# Kernel 2: fused 3x3 conv (pad=1, stride s) + BN + relu, no im2col in HBM.
# Grid = (N, Ho, 3): each step streams ONE padded input row (split by column
# parity so stride-2 taps are contiguous slices) and accumulates its 3 taps.
# ---------------------------------------------------------------------------
def fused_conv3x3_bn_relu(x_nhwc, w9, scale, shift, stride):
    """x_nhwc: (N,H,W,Cp) bf16 (lane-padded channels), w9: (9,Cp,Cop) bf16
    in kh*3+kw tap order, scale/shift: (Cop,) f32.  Returns (N,Ho,Wo,Cop) bf16."""
    N, H, W, Cp = x_nhwc.shape
    Cop = w9.shape[-1]
    s = stride
    Ho = (H + 2 - 3) // s + 1
    Wo = (W + 2 - 3) // s + 1
    Hp, Wp = H + 2, W + 2

    xp = jnp.pad(x_nhwc, ((0, 0), (1, 1), (1, 1), (0, 0)))
    Wq = pl.cdiv(Wp, s)
    if Wq * s != Wp:
        xp = jnp.pad(xp, ((0, 0), (0, 0), (0, Wq * s - Wp), (0, 0)))
    # xs[r, p, q, :] == padded row r, padded column q*s + p  (column-parity split)
    xs = xp.reshape(N, Hp, Wq, s, Cp).transpose(0, 1, 3, 2, 4).reshape(N * Hp, s, Wq, Cp)

    def kernel(x_ref, w_ref, sc_ref, sh_ref, o_ref, acc_ref):
        kh = pl.program_id(2)

        @pl.when(kh == 0)
        def _init():
            acc_ref[...] = jnp.zeros_like(acc_ref)

        contrib = None
        for kw in range(3):                      # static unrolled taps of this row
            p, base = kw % s, kw // s
            tap = x_ref[p, pl.ds(base, Wo), :]   # (Wo, Cp) bf16, contiguous slice
            d = jnp.dot(tap, w_ref[kh * 3 + kw],
                        preferred_element_type=jnp.float32)  # (Wo, Cop) f32
            contrib = d if contrib is None else contrib + d
        acc_ref[...] += contrib

        @pl.when(kh == 2)
        def _finalize():
            r = acc_ref[...] * sc_ref[...] + sh_ref[...]
            o_ref[...] = jnp.maximum(r, 0.0).astype(o_ref.dtype)

    out = pl.pallas_call(
        kernel,
        out_shape=jax.ShapeDtypeStruct((N * Ho, Wo, Cop), jnp.bfloat16),
        grid_spec=pltpu.PrefetchScalarGridSpec(
            num_scalar_prefetch=0,
            grid=(N, Ho, 3),
            in_specs=[
                # one padded input row (parity-split) per grid step
                pl.BlockSpec((None, s, Wq, Cp),
                             lambda n, ho, kh: (n * Hp + s * ho + kh, 0, 0, 0)),
                # full 9-tap weight stays VMEM-resident (constant block index)
                pl.BlockSpec((9, Cp, Cop), lambda n, ho, kh: (0, 0, 0)),
                pl.BlockSpec((1, Cop), lambda n, ho, kh: (0, 0)),
                pl.BlockSpec((1, Cop), lambda n, ho, kh: (0, 0)),
            ],
            out_specs=pl.BlockSpec((None, Wo, Cop),
                                   lambda n, ho, kh: (n * Ho + ho, 0, 0)),
            scratch_shapes=[pltpu.VMEM((Wo, Cop), jnp.float32)],
        ),
        compiler_params=pltpu.CompilerParams(
            dimension_semantics=("parallel", "parallel", "arbitrary"),
            vmem_limit_bytes=VMEM_LIMIT,
        ),
    )(xs, w9, scale.reshape(1, -1), shift.reshape(1, -1))
    return out.reshape(N, Ho, Wo, Cop)


# ---------------------------------------------------------------------------
# Parameter init + full bottleneck forward (glue)
# ---------------------------------------------------------------------------
def init_params(key, in_channel, bottleneck_channel, with_downsample):
    Cb = bottleneck_channel
    ks = jax.random.split(key, 8)

    def bn(k, c):
        k1, k2, k3, k4 = jax.random.split(k, 4)
        gamma = 1.0 + 0.1 * jax.random.normal(k1, (c,), jnp.float32)
        beta = 0.1 * jax.random.normal(k2, (c,), jnp.float32)
        mean = 0.1 * jax.random.normal(k3, (c,), jnp.float32)
        var = 0.5 + jnp.abs(jax.random.normal(k4, (c,), jnp.float32)) * 0.5
        return gamma, beta, mean, var

    p = {
        "w1": 0.1 * jax.random.normal(ks[0], (Cb, in_channel, 1, 1), jnp.float32),
        "bn1": bn(ks[1], Cb),
        "w2": 0.1 * jax.random.normal(ks[2], (Cb, Cb, 3, 3), jnp.float32),
        "bn2": bn(ks[3], Cb),
        "w3": 0.1 * jax.random.normal(ks[4], (4 * Cb, Cb, 1, 1), jnp.float32),
        "bn3": bn(ks[5], 4 * Cb),
    }
    if with_downsample:
        p["wd"] = 0.1 * jax.random.normal(ks[6], (4 * Cb, in_channel, 1, 1), jnp.float32)
        p["bnd"] = bn(ks[7], 4 * Cb)
    return p


def bottleneck_forward_pallas(x_nchw, params, stride):
    """Pallas implementation of Bottleneck_block.forward (BN in inference form)."""
    N, Cin, H, W = x_nchw.shape
    Cb = params["w1"].shape[0]
    C4 = 4 * Cb
    Cin_p = _round_up(Cin, LANE)
    Cb_p = _round_up(Cb, LANE)
    C4_p = _round_up(C4, LANE)
    has_ds = "wd" in params
    if not has_ds:
        assert stride == 1 and Cin == C4, \
            "identity residual requires stride == 1 and in_channel == 4*bottleneck_channel"
        assert Cin_p == C4_p

    # NHWC, lane-padded channels, bf16 activations (halves HBM traffic).
    x = jnp.transpose(x_nchw, (0, 2, 3, 1))
    x_p = _pad_axis(x, 3, Cin_p).astype(jnp.bfloat16)          # (N,H,W,Cin_p)

    # ---- conv1 (1x1) + bn1 + relu --------------------------------------
    w1 = params["w1"][:, :, 0, 0].T                            # (Cin, Cb)
    w1p = _pad_axis(_pad_axis(w1, 0, Cin_p), 1, Cb_p).astype(jnp.bfloat16)
    s1, b1 = _fold_bn(*params["bn1"])
    s1p, b1p = _pad_axis(s1, 0, Cb_p), _pad_axis(b1, 0, Cb_p)
    out1 = fused_matmul_bn(x_p.reshape(N * H * W, Cin_p), w1p, s1p, b1p,
                           relu=True, out_dtype=jnp.bfloat16)
    out1 = out1.reshape(N, H, W, Cb_p)

    # ---- conv2 (3x3, stride, pad=1) + bn2 + relu, fused, no im2col ------
    w2 = jnp.transpose(params["w2"], (2, 3, 1, 0)).reshape(9, Cb, Cb)   # tap-major
    w2p = _pad_axis(_pad_axis(w2, 1, Cb_p), 2, Cb_p).astype(jnp.bfloat16)
    s2, b2 = _fold_bn(*params["bn2"])
    s2p, b2p = _pad_axis(s2, 0, Cb_p), _pad_axis(b2, 0, Cb_p)
    out2 = fused_conv3x3_bn_relu(out1, w2p, s2p, b2p, stride)  # (N,Ho,Wo,Cb_p) bf16
    _, Ho, Wo, _ = out2.shape
    out2_flat = out2.reshape(N * Ho * Wo, Cb_p)

    # ---- conv3 (1x1) + bn3 + residual + relu, all in one kernel ---------
    w3 = params["w3"][:, :, 0, 0].T                            # (Cb, 4Cb)
    w3p = _pad_axis(_pad_axis(w3, 0, Cb_p), 1, C4_p).astype(jnp.bfloat16)
    s3, b3 = _fold_bn(*params["bn3"])
    s3p, b3p = _pad_axis(s3, 0, C4_p), _pad_axis(b3, 0, C4_p)

    if has_ds:
        # downsample (strided 1x1 conv + BN) computed inside the conv3 kernel
        x_s = x_p[:, ::stride, ::stride, :].reshape(N * Ho * Wo, Cin_p)
        wd = params["wd"][:, :, 0, 0].T
        wdp = _pad_axis(_pad_axis(wd, 0, Cin_p), 1, C4_p).astype(jnp.bfloat16)
        sd, bd = _fold_bn(*params["bnd"])
        sdp, bdp = _pad_axis(sd, 0, C4_p), _pad_axis(bd, 0, C4_p)
        out3 = fused_matmul_bn(out2_flat, w3p, s3p, b3p,
                               residual=x_s, res_w=wdp,
                               res_scale=sdp, res_shift=bdp,
                               relu=True, out_dtype=jnp.float32)
    else:
        res = x_p.reshape(N * H * W, Cin_p)                    # Cin_p == C4_p
        out3 = fused_matmul_bn(out2_flat, w3p, s3p, b3p,
                               residual=res, relu=True, out_dtype=jnp.float32)

    out3 = out3.reshape(N, Ho, Wo, C4_p)[..., :C4]
    return jnp.transpose(out3, (0, 3, 1, 2))                   # back to NCHW


# ---------------------------------------------------------------------------
# Pure-JAX reference (lax.conv) for correctness check
# ---------------------------------------------------------------------------
def _conv_ref(x, w, stride=1, padding=0):
    return jax.lax.conv_general_dilated(
        x, w, window_strides=(stride, stride),
        padding=[(padding, padding), (padding, padding)],
        dimension_numbers=("NCHW", "OIHW", "NCHW"),
        precision=jax.lax.Precision.HIGHEST,
    )


def _bn_ref(x, bn):
    gamma, beta, mean, var = bn
    inv = gamma / jnp.sqrt(var + EPS)
    return (x - mean[None, :, None, None]) * inv[None, :, None, None] + beta[None, :, None, None]


def bottleneck_forward_ref(x, params, stride):
    out = jax.nn.relu(_bn_ref(_conv_ref(x, params["w1"]), params["bn1"]))
    out = jax.nn.relu(_bn_ref(_conv_ref(out, params["w2"], stride=stride, padding=1), params["bn2"]))
    out = _bn_ref(_conv_ref(out, params["w3"]), params["bn3"])
    if "wd" in params:
        residual = _bn_ref(_conv_ref(x, params["wd"], stride=stride), params["bnd"])
    else:
        residual = x
    return jax.nn.relu(out + residual)


# ---------------------------------------------------------------------------
if __name__ == "__main__":
    key = jax.random.PRNGKey(0)
    kx1, kx2, kp1, kp2 = jax.random.split(key, 4)

    # Config A: stride=2, channel change -> downsample branch (fused into conv3 kernel)
    N, Cin, H, W, Cb, stride = 2, 16, 16, 16, 8, 2
    params_a = init_params(kp1, Cin, Cb, with_downsample=True)
    x_a = jax.random.normal(kx1, (N, Cin, H, W), jnp.float32)
    out_a = jax.block_until_ready(bottleneck_forward_pallas(x_a, params_a, stride))
    ref_a = bottleneck_forward_ref(x_a, params_a, stride)
    assert out_a.shape == (N, 4 * Cb, H // stride, W // stride)
    assert jnp.allclose(out_a, ref_a, atol=3e-2, rtol=3e-2), "mismatch (downsample config)"

    # Config B: stride=1, in_channel == 4*bottleneck -> identity residual
    Cin_b = 4 * Cb
    params_b = init_params(kp2, Cin_b, Cb, with_downsample=False)
    x_b = jax.random.normal(kx2, (N, Cin_b, H, W), jnp.float32)
    out_b = jax.block_until_ready(bottleneck_forward_pallas(x_b, params_b, 1))
    ref_b = bottleneck_forward_ref(x_b, params_b, 1)
    assert out_b.shape == (N, 4 * Cb, H, W)
    assert jnp.allclose(out_b, ref_b, atol=3e-2, rtol=3e-2), "mismatch (identity config)"

    print("KERNEL_OK")
</pallas_src>

<mosaic_0001>
module attributes {stable_mosaic.version = 11 : i64} {
  func.func @kernel(%arg0: i32, %arg1: memref<512x128xbf16, #tpu.memory_space<vmem>>, %arg2: memref<128x128xbf16, #tpu.memory_space<vmem>>, %arg3: memref<1x128xf32, #tpu.memory_space<vmem>>, %arg4: memref<1x128xf32, #tpu.memory_space<vmem>>, %arg5: memref<512x128xbf16, #tpu.memory_space<vmem>>) attributes {dimension_semantics = [#tpu.dimension_semantics<parallel>], iteration_bounds = array<i64: 1>, scalar_prefetch = 0 : i64, scratch_operands = 0 : i64, tpu.core_type = #tpu.core_type<tc>, window_params = [{transform_indices = @transform_0, window_bounds = array<i64: 512, 128>}, {pipeline_mode = #tpu.pipeline_mode<synchronous>, transform_indices = @transform_1, window_bounds = array<i64: 128, 128>}, {pipeline_mode = #tpu.pipeline_mode<synchronous>, transform_indices = @transform_2, window_bounds = array<i64: 1, 128>}, {pipeline_mode = #tpu.pipeline_mode<synchronous>, transform_indices = @transform_3, window_bounds = array<i64: 1, 128>}, {transform_indices = @transform_4, window_bounds = array<i64: 512, 128>}]} {
    %c0 = arith.constant 0 : index
    %c0_0 = arith.constant 0 : index
    %0 = vector.load %arg1[%c0, %c0_0] : memref<512x128xbf16, #tpu.memory_space<vmem>>, vector<512x128xbf16>
    %c0_1 = arith.constant 0 : index
    %c0_2 = arith.constant 0 : index
    %1 = vector.load %arg2[%c0_1, %c0_2] : memref<128x128xbf16, #tpu.memory_space<vmem>>, vector<128x128xbf16>
    %cst = arith.constant dense<0.000000e+00> : vector<512x128xf32>
    %2 = tpu.matmul %0, %1, %cst {dimension_numbers = #tpu.dot_dimension_numbers<[1], [0], [0], [1], [0, 0, 1, 1], [], []>} : vector<512x128xbf16>, vector<128x128xbf16>, vector<512x128xf32> -> vector<512x128xf32>
    %c0_3 = arith.constant 0 : index
    %c0_4 = arith.constant 0 : index
    %3 = vector.load %arg3[%c0_3, %c0_4] : memref<1x128xf32, #tpu.memory_space<vmem>>, vector<1x128xf32>
    %4 = vector.broadcast %3 : vector<1x128xf32> to vector<512x128xf32>
    %5 = arith.mulf %2, %4 : vector<512x128xf32>
    %c0_5 = arith.constant 0 : index
    %c0_6 = arith.constant 0 : index
    %6 = vector.load %arg4[%c0_5, %c0_6] : memref<1x128xf32, #tpu.memory_space<vmem>>, vector<1x128xf32>
    %7 = vector.broadcast %6 : vector<1x128xf32> to vector<512x128xf32>
    %8 = arith.addf %5, %7 : vector<512x128xf32>
    %cst_7 = arith.constant 0.000000e+00 : f32
    %9 = vector.broadcast %cst_7 : f32 to vector<512x128xf32>
    %10 = arith.maximumf %8, %9 : vector<512x128xf32>
    %11 = arith.truncf %10 : vector<512x128xf32> to vector<512x128xbf16>
    %c0_8 = arith.constant 0 : index
    %c0_9 = arith.constant 0 : index
    %12 = vector.load %arg5[%c0_8, %c0_9] : memref<512x128xbf16, #tpu.memory_space<vmem>>, vector<512x128xbf16>
    tpu.vector_store %arg5[%c0_8, %c0_9], %11 {strides = array<i32>} : memref<512x128xbf16, #tpu.memory_space<vmem>>, vector<512x128xbf16>,
    return
  }
  func.func @transform_0(%arg0: i32) -> (i32, i32) {
    %c0_i32 = arith.constant 0 : i32
    %c0_i32_0 = arith.constant 0 : i32
    return %arg0, %c0_i32 : i32, i32
  }
  func.func @transform_1(%arg0: i32) -> (i32, i32) {
    %c0_i32 = arith.constant 0 : i32
    %c0_i32_0 = arith.constant 0 : i32
    %c0_i32_1 = arith.constant 0 : i32
    return %c0_i32, %c0_i32_0 : i32, i32
  }
  func.func @transform_2(%arg0: i32) -> (i32, i32) {
    %c0_i32 = arith.constant 0 : i32
    %c0_i32_0 = arith.constant 0 : i32
    %c0_i32_1 = arith.constant 0 : i32
    return %c0_i32, %c0_i32_0 : i32, i32
  }
  func.func @transform_3(%arg0: i32) -> (i32, i32) {
    %c0_i32 = arith.constant 0 : i32
    %c0_i32_0 = arith.constant 0 : i32
    %c0_i32_1 = arith.constant 0 : i32
    return %c0_i32, %c0_i32_0 : i32, i32
  }
  func.func @transform_4(%arg0: i32) -> (i32, i32) {
    %c0_i32 = arith.constant 0 : i32
    %c0_i32_0 = arith.constant 0 : i32
    return %arg0, %c0_i32 : i32, i32
  }
}

</mosaic_0001>

<bundles_post_ra>
// kernel: tpu_custom_call.1
= control target key start
LH: loop header
LB: loop body
LE: loop exit
PB: predicated region body
PF: predicated region fallthrough
CT: control target
= control target key end

     0   :  { %9 = vsyncpa [#allocation3], 0  ;;  %s2126_s0 = inlined_call_operand.hbm [shape: bf16[512,128], index: 0, kind: input, shape index: {}]   ;;  %s2127_s1 = inlined_call_operand.hbm [shape: bf16[128,128], index: 1, kind: input, shape index: {}]   ;;  %s2128_s2 = inlined_call_operand.hbm [shape: f32[1,128], index: 2, kind: input, shape index: {}]   ;;  %s2129_s3 = inlined_call_operand.hbm [shape: f32[1,128], index: 3, kind: input, shape index: {}]   ;;  %s2130_s4 = inlined_call_operand.hbm [shape: bf16[512,128], index: 4, kind: output, shape index: {}]  }
   0x1   :  { %10 = vsyncpa [#allocation6], 0 }
   0x2   :  { %11 = vsyncpa [#allocation9], 0 }
   0x3   :  { %12 = vsyncpa [#allocation4], 0  ;;  %s1886_s15 = smov [#allocation5]   ;;  %s1887_s17 = smov [#allocation2]  }
   0x4   :  { %s30_s16 = sshll.u32 %s1886_s15, 4  ;;  %s18_s18 = sshll.u32 %s1887_s17, 4  ;;  %s31_s16 = int_to_ptr.vmem [resolvable:$true] %s30_s16  ;;  %s1918_s18 = int_to_ptr.vmem [resolvable:$true] %s18_s18 }
   0x5   :  { %s1768_s21 = scalar_lea.hbm %s2127_s1, 1024 }
   0x6   :  { %p1769_p0 = scmp.ne.s32.totalorder %s2127_s1, %s1768_s21  ;;  %p1772_p1 = scmp.lt.u32.totalorder %s1768_s21, %s2127_s1 }
   0x8   :  { %p1774_p2 = pnand %p1772_p1, %p1769_p0 }
   0xa   :  { %1777 = shalt.err (!%p1774_p2)
}
   0xb   :  { %s1778_s26 = scalar_lea.vmem %s31_s16, 1024  ;;  %p1783_p4 = scmp.lt.s32.totalorder %s31_s16, %s31_s16 }
   0xc   :  { %p1779_p3 = scmp.ne.s32.totalorder %s31_s16, %s1778_s26  ;;  %p1784_p5 = scmp.lt.s32.totalorder %s1778_s26, %s1778_s26 }
   0xe   :  { %p1785_p6 = por %p1784_p5, %p1783_p4 }
  0x10   :  { %p1786_p7 = pnand %p1785_p6, %p1779_p3 }
  0x12   :  { %1789 = shalt.err (!%p1786_p7)
}
  0x13   :  { %s1888_s27 = smov 64   ;;  %s1889_s28 = smov 4  }
  0x14   :  { %36 = dma.hbm_to_vmem [thread:$0]  %s2127_s1, 1024, %s31_s16, [#allocation6], %s1888_s27, %s1888_s27, %s1889_s28  }
  0x15   :  { %s1790_s7 = scalar_lea.hbm %s2126_s0, 4096 }
  0x16   :  { %p1791_p8 = scmp.ne.s32.totalorder %s2126_s0, %s1790_s7  ;;  %p1794_p9 = scmp.lt.u32.totalorder %s1790_s7, %s2126_s0 }
  0x18   :  { %p1796_p10 = pnand %p1794_p9, %p1791_p8 }
  0x1a   :  { %1799 = shalt.err (!%p1796_p10)
}
  0x1b   :  { %s1800_s12 = scalar_lea.vmem %s1918_s18, 4096  ;;  %p1805_p12 = scmp.lt.s32.totalorder %s1918_s18, %s1918_s18 }
  0x1c   :  { %p1801_p11 = scmp.ne.s32.totalorder %s1918_s18, %s1800_s12  ;;  %p1806_p13 = scmp.lt.s32.totalorder %s1800_s12, %s1800_s12 }
  0x1e   :  { %p1807_p0 = por %p1806_p13, %p1805_p12 }
  0x20   :  { %p1808_p1 = pnand %p1807_p0, %p1801_p11 }
  0x22   :  { %1811 = shalt.err (!%p1808_p1)
}
  0x23   :  { %24 = dma.hbm_to_vmem [thread:$0]  %s2126_s0, 4096, %s1918_s18, [#allocation3], %s1888_s27, %s1888_s27, %s1889_s28  }
  0x24   :  { %s1890_s14 = smov [#allocation7]   ;;  %s1891_s16 = smov [#allocation8]  }
  0x25   :  { %s43_s15 = sshll.u32 %s1890_s14, 4  ;;  %s53_s17 = sshll.u32 %s1891_s16, 4  ;;  %s44_s15 = int_to_ptr.vmem [resolvable:$true] %s43_s15  ;;  %s54_s17 = int_to_ptr.vmem [resolvable:$true] %s53_s17 }
  0x26   :  { %s1812_s21 = scalar_lea.hbm %s2128_s2, 16 }
  0x27   :  { %p1813_p2 = scmp.ne.s32.totalorder %s2128_s2, %s1812_s21  ;;  %p1816_p3 = scmp.lt.u32.totalorder %s1812_s21, %s2128_s2 }
  0x29   :  { %p1818_p4 = pnand %p1816_p3, %p1813_p2 }
  0x2b   :  { %1821 = shalt.err (!%p1818_p4)
}
  0x2c   :  { %s1822_s0 = scalar_lea.vmem %s44_s15, 16  ;;  %s1826_s18 = scalar_lea.vmem %s44_s15, 32 }
  0x2d   :  { %p1823_p5 = scmp.ne.s32.totalorder %s44_s15, %s1822_s0  ;;  %p1827_p6 = scmp.lt.s32.totalorder %s44_s15, %s44_s15 }
  0x2e   :  { %p1828_p7 = scmp.lt.s32.totalorder %s1826_s18, %s1822_s0 }
  0x30   :  { %p1829_p8 = por %p1828_p7, %p1827_p6 }
  0x32   :  { %p1830_p9 = pnand %p1829_p8, %p1823_p5 }
  0x34   :  { %1833 = shalt.err (!%p1830_p9)
}
  0x35   :  { %46 = dma.hbm_to_vmem [thread:$0]  %s2128_s2, 16, %s44_s15, [#allocation6]  }
  0x36   :  { %s1834_s6 = scalar_lea.hbm %s2129_s3, 16 }
  0x37   :  { %p1835_p10 = scmp.ne.s32.totalorder %s2129_s3, %s1834_s6  ;;  %p1838_p11 = scmp.lt.u32.totalorder %s1834_s6, %s2129_s3 }
  0x39   :  { %p1840_p12 = pnand %p1838_p11, %p1835_p10 }
  0x3b   :  { %1843 = shalt.err (!%p1840_p12)
}
  0x3c   :  { %s1844_s11 = scalar_lea.vmem %s54_s17, 16  ;;  %s1848_s12 = scalar_lea.vmem %s54_s17, 32 }
  0x3d   :  { %p1845_p13 = scmp.ne.s32.totalorder %s54_s17, %s1844_s11  ;;  %p1849_p0 = scmp.lt.s32.totalorder %s54_s17, %s54_s17 }
  0x3e   :  { %p1850_p1 = scmp.lt.s32.totalorder %s1848_s12, %s1844_s11 }
  0x40   :  { %p1851_p2 = por %p1850_p1, %p1849_p0 }
  0x42   :  { %p1852_p3 = pnand %p1851_p2, %p1845_p13 }
  0x44   :  { %1855 = shalt.err (!%p1852_p3)
}
  0x45   :  { %56 = dma.hbm_to_vmem [thread:$0]  %s2129_s3, 16, %s54_s17, [#allocation9]  }
  0x46   :  { %1878 = dma.done.wait [#allocation3], 4096  }
  0x47   :  { %1879 = vsyncadd [#allocation3], 4294963200 }
  0x48   :  { %1880 = dma.done.wait [#allocation6], 1040  }
  0x49   :  { %1881 = vsyncadd [#allocation6], 4294966256 }
  0x4a   :  { %1882 = dma.done.wait [#allocation9], 16  }
  0x4b   :  { %1883 = vsyncadd [#allocation9], 4294967280  ;;  %v1728_v0 = vld [vmem:[#allocation5] sm:$0xff]   ;;  %v1729_v1 = vld [vmem:[#allocation5 + $0x8] sm:$0xff]   ;;  %s1892_s3 = smov [#allocation10]  }
  0x4c   :  { %1625 = vmatprep.subr.bf16.mxu0 %v1728_v0  ;;  %1705 = vmatprep.subr.bf16.mxu1 %v1728_v0  ;;  %v1730_v2 = vld [vmem:[#allocation5 + $0x10] sm:$0xff]   ;;  %v1731_v3 = vld [vmem:[#allocation5 + $0x18] sm:$0xff]   ;;  %v1736_v4 = vld [vmem:[#allocation2] sm:$0xff]   ;;  %s1210_s13 = sshll.u32 %s1892_s3, 4  ;;  %s1211_s13 = int_to_ptr.vmem [resolvable:$true] %s1210_s13 }
  0x4d   :  { %1626 = vmatpush3.bf16.msra.mxu0 %v1728_v0  ;;  %1713 = vmatpush3.bf16.msra.mxu1 %v1728_v0  ;;  %v1737_v5 = vld [vmem:[#allocation2 + $0x80] sm:$0xff]   ;;  %v1733_v7 = vld [vmem:[#allocation5 + $0x28] sm:$0xff]   ;;  %v1734_v8 = vld [vmem:[#allocation5 + $0x30] sm:$0xff]   ;;  %s1856_s14 = scalar_lea.vmem %s1211_s13, 4096  ;;  %p1861_p5 = scmp.lt.s32.totalorder %s1211_s13, %s1211_s13 }
  0x4e   :  { %1627 = vmatprep.subr.bf16.mxu0 %v1729_v1  ;;  %1706 = vmatprep.subr.bf16.mxu1 %v1729_v1  ;;  %v1732_v6 = vld [vmem:[#allocation5 + $0x20] sm:$0xff]   ;;  %v1735_v9 = vld [vmem:[#allocation5 + $0x38] sm:$0xff]   ;;  %v1738_v10 = vld [vmem:[#allocation2 + $0x8] sm:$0xff]   ;;  %p1857_p4 = scmp.ne.s32.totalorder %s1211_s13, %s1856_s14  ;;  %p1862_p6 = scmp.lt.s32.totalorder %s1856_s14, %s1856_s14 }
  0x4f   :  { %1641 = vmatprep.mubr.bf16.mxu0 %v1736_v4  ;;  %1673 = vmatprep.mubr.bf16.mxu1 %v1737_v5  ;;  %v1739_v11 = vld [vmem:[#allocation2 + $0x88] sm:$0xff]   ;;  %v1740_v12 = vld [vmem:[#allocation2 + $0x10] sm:$0xff]   ;;  %v1742_v14 = vld [vmem:[#allocation2 + $0x18] sm:$0xff]  }
  0x50   :  { %v1741_v13 = vld [vmem:[#allocation2 + $0x90] sm:$0xff]   ;;  %v1743_v15 = vld [vmem:[#allocation2 + $0x98] sm:$0xff]   ;;  %v1744_v16 = vld [vmem:[#allocation2 + $0x20] sm:$0xff]   ;;  %p1863_p7 = por %p1862_p6, %p1861_p5 }
  0x51   :  { %1628 = vmatpush3.bf16.msra.mxu0 %v1729_v1  ;;  %1714 = vmatpush3.bf16.msra.mxu1 %v1729_v1  ;;  %v1745_v17 = vld [vmem:[#allocation2 + $0xa0] sm:$0xff]   ;;  %v1746_v18 = vld [vmem:[#allocation2 + $0x28] sm:$0xff]   ;;  %v1748_v20 = vld [vmem:[#allocation2 + $0x30] sm:$0xff]  }
  0x52   :  { %1629 = vmatprep.subr.bf16.mxu0 %v1730_v2  ;;  %1707 = vmatprep.subr.bf16.mxu1 %v1730_v2  ;;  %v1747_v19 = vld [vmem:[#allocation2 + $0xa8] sm:$0xff]   ;;  %v1749_v21 = vld [vmem:[#allocation2 + $0xb0] sm:$0xff]   ;;  %v1750_v22 = vld [vmem:[#allocation2 + $0x38] sm:$0xff]   ;;  %p1864_p8 = pnand %p1863_p7, %p1857_p4 }
  0x53   :  { %v1751_v23 = vld [vmem:[#allocation2 + $0xb8] sm:$0xff]   ;;  %v1752_v24 = vld [vmem:[#allocation2 + $0x40] sm:$0xff]   ;;  %v1754_v26 = vld [vmem:[#allocation2 + $0x48] sm:$0xff]  }
  0x54   :  { %v1753_v25 = vld [vmem:[#allocation2 + $0xc0] sm:$0xff]   ;;  %v1755_v27 = vld [vmem:[#allocation2 + $0xc8] sm:$0xff]   ;;  %v1756_v28 = vld [vmem:[#allocation2 + $0x50] sm:$0xff]  }
  0x55   :  { %1630 = vmatpush3.bf16.msra.mxu0 %v1730_v2  ;;  %1715 = vmatpush3.bf16.msra.mxu1 %v1730_v2  ;;  %v1757_v29 = vld [vmem:[#allocation2 + $0xd0] sm:$0xff]   ;;  %v1758_v30 = vld [vmem:[#allocation2 + $0x58] sm:$0xff]   ;;  %v1760_v32 = vld [vmem:[#allocation2 + $0x60] sm:$0xff]  }
  0x56   :  { %1631 = vmatprep.subr.bf16.mxu0 %v1731_v3  ;;  %1708 = vmatprep.subr.bf16.mxu1 %v1731_v3  ;;  %v1759_v31 = vld [vmem:[#allocation2 + $0xd8] sm:$0xff]   ;;  %v1761_v33 = vld [vmem:[#allocation2 + $0xe0] sm:$0xff]   ;;  %v1762_v34 = vld [vmem:[#allocation2 + $0x68] sm:$0xff]  }
  0x57   :  { %v1763_v35 = vld [vmem:[#allocation2 + $0xe8] sm:$0xff]   ;;  %v1764_v36 = vld [vmem:[#allocation2 + $0x70] sm:$0xff]   ;;  %v1766_v38 = vld [vmem:[#allocation2 + $0x78] sm:$0xff]  }
  0x58   :  { %v1765_v37 = vld [vmem:[#allocation2 + $0xf0] sm:$0xff]   ;;  %v1767_v39 = vld [vmem:[#allocation2 + $0xf8] sm:$0xff]   ;;  %v1979_v40 = vld [vmem:[#allocation7] ss:$0 sm:$0xff] }
  0x59   :  { %1632 = vmatpush3.bf16.msra.mxu0 %v1731_v3  ;;  %1716 = vmatpush3.bf16.msra.mxu1 %v1731_v3  ;;  %v1981_v42 = vld [vmem:[#allocation8] ss:$0 sm:$0xff] }
  0x5a   :  { %1633 = vmatprep.subr.bf16.mxu0 %v1732_v6  ;;  %1709 = vmatprep.subr.bf16.mxu1 %v1732_v6 }
  0x5d   :  { %1634 = vmatpush3.bf16.msra.mxu0 %v1732_v6  ;;  %1717 = vmatpush3.bf16.msra.mxu1 %v1732_v6 }
  0x5e   :  { %1635 = vmatprep.subr.bf16.mxu0 %v1733_v7  ;;  %1710 = vmatprep.subr.bf16.mxu1 %v1733_v7 }
  0x61   :  { %1636 = vmatpush3.bf16.msra.mxu0 %v1733_v7  ;;  %1718 = vmatpush3.bf16.msra.mxu1 %v1733_v7 }
  0x62   :  { %1637 = vmatprep.subr.bf16.mxu0 %v1734_v8  ;;  %1711 = vmatprep.subr.bf16.mxu1 %v1734_v8 }
  0x65   :  { %1638 = vmatpush3.bf16.msra.mxu0 %v1734_v8  ;;  %1719 = vmatpush3.bf16.msra.mxu1 %v1734_v8 }
  0x66   :  { %1639 = vmatprep.subr.bf16.mxu0 %v1735_v9  ;;  %1712 = vmatprep.subr.bf16.mxu1 %v1735_v9 }
  0x69   :  { %1640 = vmatpush3.bf16.msra.mxu0 %v1735_v9  ;;  %1720 = vmatpush3.bf16.msra.mxu1 %v1735_v9 }
  0x6c   :  { %1642 = vmatmul.mubr.bf16.vlgmr.msra.gmra.mrb[0].mxu0 %v1738_v10  ;;  %1674 = vmatmul.mubr.bf16.vlgmr.msra.gmra.mrb[0].mxu1 %v1739_v11 }
  0x6d   :  { %1645 = vmatprep.mubr.bf16.mxu0 %v1740_v12  ;;  %1677 = vmatprep.mubr.bf16.mxu1 %v1741_v13 }
  0x74   :  { %1646 = vmatmul.mubr.bf16.gmra.mrb[4].mxu0 %v1742_v14  ;;  %1678 = vmatmul.mubr.bf16.gmra.mrb[4].mxu1 %v1743_v15 }
  0x75   :  { %1649 = vmatprep.mubr.bf16.mxu0 %v1744_v16  ;;  %1681 = vmatprep.mubr.bf16.mxu1 %v1745_v17 }
  0x7c   :  { %1650 = vmatmul.mubr.bf16.gmra.mrb[8].mxu0 %v1746_v18  ;;  %1682 = vmatmul.mubr.bf16.gmra.mrb[8].mxu1 %v1747_v19 }
  0x7d   :  { %1653 = vmatprep.mubr.bf16.mxu0 %v1748_v20  ;;  %1685 = vmatprep.mubr.bf16.mxu1 %v1749_v21 }
  0x84   :  { %1654 = vmatmul.mubr.bf16.gmra.mrb[12].mxu0 %v1750_v22  ;;  %1686 = vmatmul.mubr.bf16.gmra.mrb[12].mxu1 %v1751_v23 }
  0x85   :  { %1657 = vmatprep.mubr.bf16.mxu0 %v1752_v24  ;;  %1689 = vmatprep.mubr.bf16.mxu1 %v1753_v25 }
  0x8c   :  { %1658 = vmatmul.mubr.bf16.gmra.mrb[16].mxu0 %v1754_v26  ;;  %1690 = vmatmul.mubr.bf16.gmra.mrb[16].mxu1 %v1755_v27 }
  0x8d   :  { %1661 = vmatprep.mubr.bf16.mxu0 %v1756_v28  ;;  %1693 = vmatprep.mubr.bf16.mxu1 %v1757_v29 }
  0x94   :  { %1662 = vmatmul.mubr.bf16.gmra.mrb[20].mxu0 %v1758_v30  ;;  %1694 = vmatmul.mubr.bf16.gmra.mrb[20].mxu1 %v1759_v31 }
  0x95   :  { %1665 = vmatprep.mubr.bf16.mxu0 %v1760_v32  ;;  %1697 = vmatprep.mubr.bf16.mxu1 %v1761_v33 }
  0x9c   :  { %1666 = vmatmul.mubr.bf16.gmra.mrb[24].mxu0 %v1762_v34  ;;  %1698 = vmatmul.mubr.bf16.gmra.mrb[24].mxu1 %v1763_v35 }
  0x9d   :  { %1669 = vmatprep.mubr.bf16.mxu0 %v1764_v36  ;;  %1701 = vmatprep.mubr.bf16.mxu1 %v1765_v37 }
  0xa4   :  { %1670 = vmatmul.mubr.bf16.gmra.mrb[28].mxu0 %v1766_v38  ;;  %1702 = vmatmul.mubr.bf16.gmra.mrb[28].mxu1 %v1767_v39 }
 0x13f   :  { %v1643_v41 = vpop.f32.mrb[0].mxu0  ;;  %v1675_v43 = vpop.f32.mrb[0].mxu1 }
 0x140   :  { %v688_v44 = vmul.f32 %v1643_v41, %v1979_v40  ;;  %v720_v45 = vmul.f32 %v1675_v43, %v1979_v40  ;;  %v424_v46 = vpop.f32.mrb[1].mxu0  ;;  %v552_v47 = vpop.f32.mrb[1].mxu1 }
 0x141   :  { %v686_v48 = vmul.f32 %v1979_v40, %v424_v46  ;;  %v718_v49 = vmul.f32 %v1979_v40, %v552_v47  ;;  %v1644_v50 = vpop.f32.mrb[2].mxu0  ;;  %v1676_v51 = vpop.f32.mrb[2].mxu1 }
 0x142   :  { %v759_v52 = vadd.f32 %v1981_v42, %v688_v44  ;;  %v791_v53 = vadd.f32 %v1981_v42, %v720_v45  ;;  %v689_v54 = vmul.f32 %v1644_v50, %v1979_v40  ;;  %v721_v55 = vmul.f32 %v1676_v51, %v1979_v40  ;;  %v427_v56 = vpop.f32.mrb[3].mxu0  ;;  %v555_v57 = vpop.f32.mrb[3].mxu1 }
 0x143   :  { %v757_v58 = vadd.f32 %v1981_v42, %v686_v48  ;;  %v789_v59 = vadd.f32 %v1981_v42, %v718_v49  ;;  %v687_v60 = vmul.f32 %v1979_v40, %v427_v56  ;;  %v719_v61 = vmul.f32 %v1979_v40, %v555_v57 }
 0x144   :  { %v760_v62 = vadd.f32 %v1981_v42, %v689_v54  ;;  %v792_v63 = vadd.f32 %v1981_v42, %v721_v55  ;;  %v823_v2 = vmax.f32 %v759_v52, 0.0  ;;  %v855_v3 = vmax.f32 %v791_v53, 0.0 }
 0x145   :  { %v758_v0 = vadd.f32 %v1981_v42, %v687_v60  ;;  %v790_v1 = vadd.f32 %v1981_v42, %v719_v61  ;;  %v821_v6 = vmax.f32 %v757_v58, 0.0  ;;  %v853_v7 = vmax.f32 %v789_v59, 0.0 }
 0x146   :  { %v824_v4 = vmax.f32 %v760_v62, 0.0  ;;  %v856_v5 = vmax.f32 %v792_v63, 0.0 }
 0x147   :  { %v822_v8 = vmax.f32 %v758_v0, 0.0  ;;  %v854_v9 = vmax.f32 %v790_v1, 0.0  ;;  %v1647_v10 = vpop.f32.mrb[4].mxu0  ;;  %v1679_v11 = vpop.f32.mrb[4].mxu1 }
 0x148   :  { %v1402_v12 = vpack.c.bf16 %v824_v4, %v823_v2  ;;  %v1482_v13 = vpack.c.bf16 %v856_v5, %v855_v3  ;;  %v692_v14 = vmul.f32 %v1647_v10, %v1979_v40  ;;  %v724_v15 = vmul.f32 %v1679_v11, %v1979_v40  ;;  %v440_v16 = vpop.f32.mrb[5].mxu0  ;;  %v568_v17 = vpop.f32.mrb[5].mxu1 }
 0x149   :  { %v1397_v18 = vpack.c.bf16 %v822_v8, %v821_v6  ;;  %v1477_v19 = vpack.c.bf16 %v854_v9, %v853_v7  ;;  %v690_v20 = vmul.f32 %v1979_v40, %v440_v16  ;;  %v722_v21 = vmul.f32 %v1979_v40, %v568_v17  ;;  %v1648_v22 = vpop.f32.mrb[6].mxu0  ;;  %v1680_v23 = vpop.f32.mrb[6].mxu1 }
 0x14a   :  { %1554 = vst [vmem:[#allocation10 + $0x8] sm:$0xff] %v1402_v12   ;;  %1570 = vst [vmem:[#allocation10 + $0x88] sm:$0xff] %v1482_v13   ;;  %v763_v24 = vadd.f32 %v1981_v42, %v692_v14  ;;  %v795_v25 = vadd.f32 %v1981_v42, %v724_v15  ;;  %v693_v26 = vmul.f32 %v1648_v22, %v1979_v40  ;;  %v443_v28 = vpop.f32.mrb[7].mxu0  ;;  %v571_v29 = vpop.f32.mrb[7].mxu1 }
 0x14b   :  { %v725_v27 = vmul.f32 %v1680_v23, %v1979_v40  ;;  %1398 = vst [vmem:[#allocation10] sm:$0xff] %v1397_v18   ;;  %1569 = vst [vmem:[#allocation10 + $0x80] sm:$0xff] %v1477_v19   ;;  %v761_v30 = vadd.f32 %v1981_v42, %v690_v20  ;;  %v793_v31 = vadd.f32 %v1981_v42, %v722_v21 }
 0x14c   :  { %v691_v32 = vmul.f32 %v1979_v40, %v443_v28  ;;  %v723_v33 = vmul.f32 %v1979_v40, %v571_v29  ;;  %v764_v34 = vadd.f32 %v1981_v42, %v693_v26  ;;  %v827_v38 = vmax.f32 %v763_v24, 0.0 }
 0x14d   :  { %v796_v35 = vadd.f32 %v1981_v42, %v725_v27  ;;  %v859_v39 = vmax.f32 %v795_v25, 0.0  ;;  %v825_v44 = vmax.f32 %v761_v30, 0.0  ;;  %v857_v45 = vmax.f32 %v793_v31, 0.0 }
 0x14e   :  { %v762_v36 = vadd.f32 %v1981_v42, %v691_v32  ;;  %v794_v37 = vadd.f32 %v1981_v42, %v723_v33  ;;  %v828_v41 = vmax.f32 %v764_v34, 0.0 }
 0x14f   :  { %v860_v43 = vmax.f32 %v796_v35, 0.0  ;;  %v1651_v48 = vpop.f32.mrb[8].mxu0  ;;  %v1683_v49 = vpop.f32.mrb[8].mxu1 }
 0x150   :  { %v826_v46 = vmax.f32 %v762_v36, 0.0  ;;  %v858_v47 = vmax.f32 %v794_v37, 0.0  ;;  %v1412_v50 = vpack.c.bf16 %v828_v41, %v827_v38  ;;  %v696_v52 = vmul.f32 %v1651_v48, %v1979_v40  ;;  %v456_v54 = vpop.f32.mrb[9].mxu0  ;;  %v584_v55 = vpop.f32.mrb[9].mxu1 }
 0x151   :  { %v1492_v51 = vpack.c.bf16 %v860_v43, %v859_v39  ;;  %v728_v53 = vmul.f32 %v1683_v49, %v1979_v40  ;;  %v694_v58 = vmul.f32 %v1979_v40, %v456_v54  ;;  %v726_v59 = vmul.f32 %v1979_v40, %v584_v55  ;;  %v1652_v60 = vpop.f32.mrb[10].mxu0  ;;  %v1684_v61 = vpop.f32.mrb[10].mxu1 }
 0x152   :  { %v1407_v56 = vpack.c.bf16 %v826_v46, %v825_v44  ;;  %v1487_v57 = vpack.c.bf16 %v858_v47, %v857_v45  ;;  %1556 = vst [vmem:[#allocation10 + $0x18] sm:$0xff] %v1412_v50   ;;  %v767_v62 = vadd.f32 %v1981_v42, %v696_v52  ;;  %v697_v0 = vmul.f32 %v1652_v60, %v1979_v40  ;;  %v459_v2 = vpop.f32.mrb[11].mxu0  ;;  %v587_v3 = vpop.f32.mrb[11].mxu1 }
 0x153   :  { %1572 = vst [vmem:[#allocation10 + $0x98] sm:$0xff] %v1492_v51   ;;  %v799_v63 = vadd.f32 %v1981_v42, %v728_v53  ;;  %v729_v1 = vmul.f32 %v1684_v61, %v1979_v40  ;;  %v765_v4 = vadd.f32 %v1981_v42, %v694_v58  ;;  %v797_v5 = vadd.f32 %v1981_v42, %v726_v59 }
 0x154   :  { %1555 = vst [vmem:[#allocation10 + $0x10] sm:$0xff] %v1407_v56   ;;  %1571 = vst [vmem:[#allocation10 + $0x90] sm:$0xff] %v1487_v57   ;;  %v695_v6 = vmul.f32 %v1979_v40, %v459_v2  ;;  %v727_v7 = vmul.f32 %v1979_v40, %v587_v3  ;;  %v768_v8 = vadd.f32 %v1981_v42, %v697_v0  ;;  %v831_v12 = vmax.f32 %v767_v62, 0.0 }
 0x155   :  { %v800_v9 = vadd.f32 %v1981_v42, %v729_v1  ;;  %v863_v13 = vmax.f32 %v799_v63, 0.0  ;;  %v829_v16 = vmax.f32 %v765_v4, 0.0  ;;  %v861_v17 = vmax.f32 %v797_v5, 0.0 }
 0x156   :  { %v766_v10 = vadd.f32 %v1981_v42, %v695_v6  ;;  %v798_v11 = vadd.f32 %v1981_v42, %v727_v7  ;;  %v832_v14 = vmax.f32 %v768_v8, 0.0 }
 0x157   :  { %v864_v15 = vmax.f32 %v800_v9, 0.0  ;;  %v1655_v20 = vpop.f32.mrb[12].mxu0  ;;  %v1687_v21 = vpop.f32.mrb[12].mxu1 }
 0x158   :  { %v830_v18 = vmax.f32 %v766_v10, 0.0  ;;  %v862_v19 = vmax.f32 %v798_v11, 0.0  ;;  %v1422_v22 = vpack.c.bf16 %v832_v14, %v831_v12  ;;  %v700_v24 = vmul.f32 %v1655_v20, %v1979_v40  ;;  %v472_v26 = vpop.f32.mrb[13].mxu0  ;;  %v600_v27 = vpop.f32.mrb[13].mxu1 }
 0x159   :  { %v1502_v23 = vpack.c.bf16 %v864_v15, %v863_v13  ;;  %v732_v25 = vmul.f32 %v1687_v21, %v1979_v40  ;;  %v698_v30 = vmul.f32 %v1979_v40, %v472_v26  ;;  %v730_v31 = vmul.f32 %v1979_v40, %v600_v27  ;;  %v1656_v32 = vpop.f32.mrb[14].mxu0  ;;  %v1688_v33 = vpop.f32.mrb[14].mxu1 }
 0x15a   :  { %v1417_v28 = vpack.c.bf16 %v830_v18, %v829_v16  ;;  %v1497_v29 = vpack.c.bf16 %v862_v19, %v861_v17  ;;  %1558 = vst [vmem:[#allocation10 + $0x28] sm:$0xff] %v1422_v22   ;;  %v771_v34 = vadd.f32 %v1981_v42, %v700_v24  ;;  %v701_v36 = vmul.f32 %v1656_v32, %v1979_v40  ;;  %v475_v38 = vpop.f32.mrb[15].mxu0  ;;  %v603_v39 = vpop.f32.mrb[15].mxu1 }
 0x15b   :  { %1574 = vst [vmem:[#allocation10 + $0xa8] sm:$0xff] %v1502_v23   ;;  %v803_v35 = vadd.f32 %v1981_v42, %v732_v25  ;;  %v733_v37 = vmul.f32 %v1688_v33, %v1979_v40  ;;  %v769_v41 = vadd.f32 %v1981_v42, %v698_v30  ;;  %v801_v43 = vadd.f32 %v1981_v42, %v730_v31 }
 0x15c   :  { %1557 = vst [vmem:[#allocation10 + $0x20] sm:$0xff] %v1417_v28   ;;  %1573 = vst [vmem:[#allocation10 + $0xa0] sm:$0xff] %v1497_v29   ;;  %v699_v44 = vmul.f32 %v1979_v40, %v475_v38  ;;  %v731_v45 = vmul.f32 %v1979_v40, %v603_v39  ;;  %v772_v46 = vadd.f32 %v1981_v42, %v701_v36  ;;  %v835_v50 = vmax.f32 %v771_v34, 0.0 }
 0x15d   :  { %v804_v47 = vadd.f32 %v1981_v42, %v733_v37  ;;  %v867_v51 = vmax.f32 %v803_v35, 0.0  ;;  %v833_v54 = vmax.f32 %v769_v41, 0.0  ;;  %v865_v55 = vmax.f32 %v801_v43, 0.0 }
 0x15e   :  { %v770_v48 = vadd.f32 %v1981_v42, %v699_v44  ;;  %v802_v49 = vadd.f32 %v1981_v42, %v731_v45  ;;  %v836_v52 = vmax.f32 %v772_v46, 0.0 }
 0x15f   :  { %v868_v53 = vmax.f32 %v804_v47, 0.0  ;;  %v1659_v58 = vpop.f32.mrb[16].mxu0  ;;  %v1691_v59 = vpop.f32.mrb[16].mxu1 }
 0x160   :  { %v834_v56 = vmax.f32 %v770_v48, 0.0  ;;  %v866_v57 = vmax.f32 %v802_v49, 0.0  ;;  %v1432_v60 = vpack.c.bf16 %v836_v52, %v835_v50  ;;  %v704_v62 = vmul.f32 %v1659_v58, %v1979_v40  ;;  %v488_v0 = vpop.f32.mrb[17].mxu0  ;;  %v616_v1 = vpop.f32.mrb[17].mxu1 }
 0x161   :  { %v1512_v61 = vpack.c.bf16 %v868_v53, %v867_v51  ;;  %v736_v63 = vmul.f32 %v1691_v59, %v1979_v40  ;;  %v702_v4 = vmul.f32 %v1979_v40, %v488_v0  ;;  %v734_v5 = vmul.f32 %v1979_v40, %v616_v1  ;;  %v1660_v6 = vpop.f32.mrb[18].mxu0  ;;  %v1692_v7 = vpop.f32.mrb[18].mxu1 }
 0x162   :  { %v1427_v2 = vpack.c.bf16 %v834_v56, %v833_v54  ;;  %v1507_v3 = vpack.c.bf16 %v866_v57, %v865_v55  ;;  %1560 = vst [vmem:[#allocation10 + $0x38] sm:$0xff] %v1432_v60   ;;  %v775_v8 = vadd.f32 %v1981_v42, %v704_v62  ;;  %v705_v10 = vmul.f32 %v1660_v6, %v1979_v40  ;;  %v491_v12 = vpop.f32.mrb[19].mxu0  ;;  %v619_v13 = vpop.f32.mrb[19].mxu1 }
 0x163   :  { %1576 = vst [vmem:[#allocation10 + $0xb8] sm:$0xff] %v1512_v61   ;;  %v807_v9 = vadd.f32 %v1981_v42, %v736_v63  ;;  %v737_v11 = vmul.f32 %v1692_v7, %v1979_v40  ;;  %v773_v14 = vadd.f32 %v1981_v42, %v702_v4  ;;  %v805_v15 = vadd.f32 %v1981_v42, %v734_v5 }
 0x164   :  { %1559 = vst [vmem:[#allocation10 + $0x30] sm:$0xff] %v1427_v2   ;;  %1575 = vst [vmem:[#allocation10 + $0xb0] sm:$0xff] %v1507_v3   ;;  %v703_v16 = vmul.f32 %v1979_v40, %v491_v12  ;;  %v735_v17 = vmul.f32 %v1979_v40, %v619_v13  ;;  %v776_v18 = vadd.f32 %v1981_v42, %v705_v10  ;;  %v839_v22 = vmax.f32 %v775_v8, 0.0 }
 0x165   :  { %v808_v19 = vadd.f32 %v1981_v42, %v737_v11  ;;  %v871_v23 = vmax.f32 %v807_v9, 0.0  ;;  %v837_v26 = vmax.f32 %v773_v14, 0.0  ;;  %v869_v27 = vmax.f32 %v805_v15, 0.0 }
 0x166   :  { %v774_v20 = vadd.f32 %v1981_v42, %v703_v16  ;;  %v806_v21 = vadd.f32 %v1981_v42, %v735_v17  ;;  %v840_v24 = vmax.f32 %v776_v18, 0.0 }
 0x167   :  { %v872_v25 = vmax.f32 %v808_v19, 0.0  ;;  %v1663_v30 = vpop.f32.mrb[20].mxu0  ;;  %v1695_v31 = vpop.f32.mrb[20].mxu1 }
 0x168   :  { %v838_v28 = vmax.f32 %v774_v20, 0.0  ;;  %v870_v29 = vmax.f32 %v806_v21, 0.0  ;;  %v1442_v32 = vpack.c.bf16 %v840_v24, %v839_v22  ;;  %v708_v34 = vmul.f32 %v1663_v30, %v1979_v40  ;;  %v504_v36 = vpop.f32.mrb[21].mxu0  ;;  %v632_v37 = vpop.f32.mrb[21].mxu1 }
 0x169   :  { %v1522_v33 = vpack.c.bf16 %v872_v25, %v871_v23  ;;  %v740_v35 = vmul.f32 %v1695_v31, %v1979_v40  ;;  %v706_v41 = vmul.f32 %v1979_v40, %v504_v36  ;;  %v738_v43 = vmul.f32 %v1979_v40, %v632_v37  ;;  %v1664_v44 = vpop.f32.mrb[22].mxu0  ;;  %v1696_v45 = vpop.f32.mrb[22].mxu1 }
 0x16a   :  { %v1437_v38 = vpack.c.bf16 %v838_v28, %v837_v26  ;;  %v1517_v39 = vpack.c.bf16 %v870_v29, %v869_v27  ;;  %1562 = vst [vmem:[#allocation10 + $0x48] sm:$0xff] %v1442_v32   ;;  %v779_v46 = vadd.f32 %v1981_v42, %v708_v34  ;;  %v709_v48 = vmul.f32 %v1664_v44, %v1979_v40  ;;  %v507_v50 = vpop.f32.mrb[23].mxu0  ;;  %v635_v51 = vpop.f32.mrb[23].mxu1 }
 0x16b   :  { %1578 = vst [vmem:[#allocation10 + $0xc8] sm:$0xff] %v1522_v33   ;;  %v811_v47 = vadd.f32 %v1981_v42, %v740_v35  ;;  %v741_v49 = vmul.f32 %v1696_v45, %v1979_v40  ;;  %v777_v52 = vadd.f32 %v1981_v42, %v706_v41  ;;  %v809_v53 = vadd.f32 %v1981_v42, %v738_v43 }
 0x16c   :  { %1561 = vst [vmem:[#allocation10 + $0x40] sm:$0xff] %v1437_v38   ;;  %1577 = vst [vmem:[#allocation10 + $0xc0] sm:$0xff] %v1517_v39   ;;  %v707_v54 = vmul.f32 %v1979_v40, %v507_v50  ;;  %v739_v55 = vmul.f32 %v1979_v40, %v635_v51  ;;  %v780_v56 = vadd.f32 %v1981_v42, %v709_v48  ;;  %v843_v60 = vmax.f32 %v779_v46, 0.0 }
 0x16d   :  { %v812_v57 = vadd.f32 %v1981_v42, %v741_v49  ;;  %v875_v61 = vmax.f32 %v811_v47, 0.0  ;;  %v841_v0 = vmax.f32 %v777_v52, 0.0  ;;  %v873_v1 = vmax.f32 %v809_v53, 0.0 }
 0x16e   :  { %v778_v58 = vadd.f32 %v1981_v42, %v707_v54  ;;  %v810_v59 = vadd.f32 %v1981_v42, %v739_v55  ;;  %v844_v62 = vmax.f32 %v780_v56, 0.0 }
 0x16f   :  { %v876_v63 = vmax.f32 %v812_v57, 0.0  ;;  %v1667_v4 = vpop.f32.mrb[24].mxu0  ;;  %v1699_v5 = vpop.f32.mrb[24].mxu1 }
 0x170   :  { %v842_v2 = vmax.f32 %v778_v58, 0.0  ;;  %v874_v3 = vmax.f32 %v810_v59, 0.0  ;;  %v1452_v6 = vpack.c.bf16 %v844_v62, %v843_v60  ;;  %v712_v8 = vmul.f32 %v1667_v4, %v1979_v40  ;;  %v520_v10 = vpop.f32.mrb[25].mxu0  ;;  %v648_v11 = vpop.f32.mrb[25].mxu1 }
 0x171   :  { %v1532_v7 = vpack.c.bf16 %v876_v63, %v875_v61  ;;  %v744_v9 = vmul.f32 %v1699_v5, %v1979_v40  ;;  %v710_v14 = vmul.f32 %v1979_v40, %v520_v10  ;;  %v742_v15 = vmul.f32 %v1979_v40, %v648_v11  ;;  %v1668_v16 = vpop.f32.mrb[26].mxu0  ;;  %v1700_v17 = vpop.f32.mrb[26].mxu1 }
 0x172   :  { %v1447_v12 = vpack.c.bf16 %v842_v2, %v841_v0  ;;  %v1527_v13 = vpack.c.bf16 %v874_v3, %v873_v1  ;;  %1564 = vst [vmem:[#allocation10 + $0x58] sm:$0xff] %v1452_v6   ;;  %v783_v18 = vadd.f32 %v1981_v42, %v712_v8  ;;  %v713_v20 = vmul.f32 %v1668_v16, %v1979_v40  ;;  %v523_v22 = vpop.f32.mrb[27].mxu0  ;;  %v651_v23 = vpop.f32.mrb[27].mxu1 }
 0x173   :  { %1580 = vst [vmem:[#allocation10 + $0xd8] sm:$0xff] %v1532_v7   ;;  %v815_v19 = vadd.f32 %v1981_v42, %v744_v9  ;;  %v745_v21 = vmul.f32 %v1700_v17, %v1979_v40  ;;  %v781_v24 = vadd.f32 %v1981_v42, %v710_v14  ;;  %v813_v25 = vadd.f32 %v1981_v42, %v742_v15 }
 0x174   :  { %1563 = vst [vmem:[#allocation10 + $0x50] sm:$0xff] %v1447_v12   ;;  %1579 = vst [vmem:[#allocation10 + $0xd0] sm:$0xff] %v1527_v13   ;;  %v711_v26 = vmul.f32 %v1979_v40, %v523_v22  ;;  %v743_v27 = vmul.f32 %v1979_v40, %v651_v23  ;;  %v784_v28 = vadd.f32 %v1981_v42, %v713_v20  ;;  %v847_v32 = vmax.f32 %v783_v18, 0.0 }
 0x175   :  { %v816_v29 = vadd.f32 %v1981_v42, %v745_v21  ;;  %v879_v33 = vmax.f32 %v815_v19, 0.0  ;;  %v845_v36 = vmax.f32 %v781_v24, 0.0  ;;  %v877_v37 = vmax.f32 %v813_v25, 0.0 }
 0x176   :  { %v782_v30 = vadd.f32 %v1981_v42, %v711_v26  ;;  %v814_v31 = vadd.f32 %v1981_v42, %v743_v27  ;;  %v848_v34 = vmax.f32 %v784_v28, 0.0 }
 0x177   :  { %v880_v35 = vmax.f32 %v816_v29, 0.0  ;;  %v1671_v41 = vpop.f32.mrb[28].mxu0  ;;  %v1703_v43 = vpop.f32.mrb[28].mxu1 }
 0x178   :  { %v846_v38 = vmax.f32 %v782_v30, 0.0  ;;  %v878_v39 = vmax.f32 %v814_v31, 0.0  ;;  %v1462_v44 = vpack.c.bf16 %v848_v34, %v847_v32  ;;  %v716_v46 = vmul.f32 %v1671_v41, %v1979_v40  ;;  %v536_v48 = vpop.f32.mrb[29].mxu0  ;;  %v664_v49 = vpop.f32.mrb[29].mxu1 }
 0x179   :  { %v1542_v45 = vpack.c.bf16 %v880_v35, %v879_v33  ;;  %v748_v47 = vmul.f32 %v1703_v43, %v1979_v40  ;;  %v714_v52 = vmul.f32 %v1979_v40, %v536_v48  ;;  %v746_v53 = vmul.f32 %v1979_v40, %v664_v49  ;;  %v1672_v54 = vpop.f32.mrb[30].mxu0  ;;  %v1704_v55 = vpop.f32.mrb[30].mxu1 }
 0x17a   :  { %v1457_v50 = vpack.c.bf16 %v846_v38, %v845_v36  ;;  %v1537_v51 = vpack.c.bf16 %v878_v39, %v877_v37  ;;  %1566 = vst [vmem:[#allocation10 + $0x68] sm:$0xff] %v1462_v44   ;;  %v787_v56 = vadd.f32 %v1981_v42, %v716_v46  ;;  %v717_v58 = vmul.f32 %v1672_v54, %v1979_v40  ;;  %v539_v60 = vpop.f32.mrb[31].mxu0  ;;  %v667_v61 = vpop.f32.mrb[31].mxu1 }
 0x17b   :  { %1582 = vst [vmem:[#allocation10 + $0xe8] sm:$0xff] %v1542_v45   ;;  %v819_v57 = vadd.f32 %v1981_v42, %v748_v47  ;;  %v749_v59 = vmul.f32 %v1704_v55, %v1979_v40  ;;  %v785_v62 = vadd.f32 %v1981_v42, %v714_v52  ;;  %v817_v63 = vadd.f32 %v1981_v42, %v746_v53 }
 0x17c   :  { %1565 = vst [vmem:[#allocation10 + $0x60] sm:$0xff] %v1457_v50   ;;  %1581 = vst [vmem:[#allocation10 + $0xe0] sm:$0xff] %v1537_v51   ;;  %v715_v0 = vmul.f32 %v1979_v40, %v539_v60  ;;  %v747_v1 = vmul.f32 %v1979_v40, %v667_v61  ;;  %v788_v2 = vadd.f32 %v1981_v42, %v717_v58  ;;  %v851_v6 = vmax.f32 %v787_v56, 0.0 }
 0x17d   :  { %v820_v3 = vadd.f32 %v1981_v42, %v749_v59  ;;  %v883_v7 = vmax.f32 %v819_v57, 0.0  ;;  %v849_v10 = vmax.f32 %v785_v62, 0.0  ;;  %v881_v11 = vmax.f32 %v817_v63, 0.0 }
 0x17e   :  { %v786_v4 = vadd.f32 %v1981_v42, %v715_v0  ;;  %v818_v5 = vadd.f32 %v1981_v42, %v747_v1  ;;  %v852_v8 = vmax.f32 %v788_v2, 0.0 }
 0x17f   :  { %v884_v9 = vmax.f32 %v820_v3, 0.0 }
 0x180   :  { %v850_v12 = vmax.f32 %v786_v4, 0.0  ;;  %v882_v13 = vmax.f32 %v818_v5, 0.0  ;;  %v1472_v14 = vpack.c.bf16 %v852_v8, %v851_v6 }
 0x181   :  { %v1552_v40 = vpack.c.bf16 %v884_v9, %v883_v7 }
 0x182   :  { %v1467_v15 = vpack.c.bf16 %v850_v12, %v849_v10  ;;  %v1547_v16 = vpack.c.bf16 %v882_v13, %v881_v11  ;;  %1568 = vst [vmem:[#allocation10 + $0x78] sm:$0xff] %v1472_v14  }
 0x183   :  { %1584 = vst [vmem:[#allocation10 + $0xf8] sm:$0xff] %v1552_v40  }
 0x184   :  { %1567 = vst [vmem:[#allocation10 + $0x70] sm:$0xff] %v1467_v15   ;;  %1583 = vst [vmem:[#allocation10 + $0xf0] sm:$0xff] %v1547_v16  }
 0x185   :  { %1867 = shalt.err (!%p1864_p8)
}
 0x186   :  { %s1868_s17 = scalar_lea.hbm %s2130_s4, 4096 }
 0x187   :  { %p1869_p9 = scmp.ne.s32.totalorder %s2130_s4, %s1868_s17  ;;  %p1872_p10 = scmp.lt.u32.totalorder %s1868_s17, %s2130_s4 }
 0x189   :  { %p1874_p11 = pnand %p1872_p10, %p1869_p9 }
 0x18b   :  { %1877 = shalt.err (!%p1874_p11)
}
 0x18c   :  { %1216 = dma.vmem_to_hbm [thread:$0]  %s1211_s13, 4096, %s2130_s4, [#allocation4], %s1888_s27, %s1888_s27, %s1889_s28  }
 0x18d   :  { %1884 = dma.done.wait [#allocation4], 4096  }
 0x18e   :  { %1885 = vsyncadd [#allocation4], 4294963200 }
 0x18f   :  { %1220 = vsyncpa [#allocation3], 1 }
 0x190   :  { %1221 = vsyncpa [#allocation6], 1 }
 0x191   :  { %1222 = vsyncpa [#allocation9], 1 }
 0x192   :  { %1223 = vsyncpa [#allocation4], 1 }

</bundles_post_ra>
